<compile_context>
chip_gen: v7x
topology: tpu7x:2x2x1
jax: 0.10.0
libtpu: 0.0.40
codegen_flags: <defaults>
</compile_context>

<pallas_src>
import jax
import jax.numpy as jnp
from jax.experimental import pallas as pl
from jax.experimental.pallas import tpu as pltpu


TILE_M = 512  # lane-dense (multiple of 128); raise for very large M on v5e


def _constraint_loss_kernel(lmbda_ref, value_ref, loss_ref):
    """loss[0, :] = sum_k lmbda[k] * value[k, :] for one (K, TILE_M) tile.

    lmbda_ref : (K,)  f32 in SMEM (scalar-prefetched, already clamped)
    value_ref : (K, TILE_M) f32 VMEM tile
    loss_ref  : (1, TILE_M) f32 VMEM tile
    """
    k_dim = value_ref.shape[0]            # K <= 8, static -> full unroll on VPU
    acc = lmbda_ref[0] * value_ref[0:1, :]
    for k in range(1, k_dim):
        acc = acc + lmbda_ref[k] * value_ref[k:k + 1, :]
    loss_ref[...] = acc


def _pallas_loss(lmbda_flat, value, tile_m):
    """lmbda_flat: (K,) f32 (clamped). value: (K, M) f32 with M % tile_m == 0."""
    K, M = value.shape
    grid = (M // tile_m,)
    return pl.pallas_call(
        _constraint_loss_kernel,
        out_shape=jax.ShapeDtypeStruct((1, M), jnp.float32),
        grid_spec=pltpu.PrefetchScalarGridSpec(
            num_scalar_prefetch=1,                      # lmbda -> SMEM scalars
            grid=grid,
            in_specs=[pl.BlockSpec((K, tile_m), lambda i, lm: (0, i))],
            out_specs=pl.BlockSpec((1, tile_m), lambda i, lm: (0, i)),
        ),
        compiler_params=pltpu.CompilerParams(
            dimension_semantics=("parallel",),          # shard tiles across TCs (v7x)
        ),
    )(lmbda_flat, value)


def constraint_forward(lmbda, value, *, tile_m=TILE_M):
    """Matches Constraint.forward plus the in-place lmbda.data clamp.

    Returns (loss, new_lmbda).
    """
    lmbda = lmbda.astype(jnp.float32)
    value = value.astype(jnp.float32)
    K, M = value.shape

    # 1. in-place .data update: clamp against the norm of the *unclamped* lmbda
    norm = jnp.sqrt(jnp.sum(lmbda * lmbda))
    lm_clamped = jnp.clip(lmbda, 0.0, norm + 1.0 / 0.05)

    # 2. loss = lmbda^T @ value
    if M < tile_m:
        # Tiny M (the module's actual shape is (K, 1)): a Pallas launch is pure
        # fixed overhead; let XLA fuse the K<=8 weighted sum instead.
        return lm_clamped.T @ value, lm_clamped

    m_pad = pl.cdiv(M, tile_m) * tile_m
    v = value if m_pad == M else jnp.pad(value, ((0, 0), (0, m_pad - M)))
    loss = _pallas_loss(lm_clamped.reshape(K), v, tile_m)
    return loss[:, :M], lm_clamped


def _reference(lmbda, value):
    lm_c = jnp.clip(lmbda, 0.0, jnp.linalg.norm(lmbda) + 1.0 / 0.05)
    return lm_c.T @ value, lm_c


if __name__ == "__main__":
    key = jax.random.PRNGKey(0)
    k_lmbda, k_v_small, k_v_big = jax.random.split(key, 3)

    fair = "dp"                           # 'dp' -> K = 4, 'eo' -> K = 8
    K = 4 if fair == "dp" else 8

    # deterministic "parameter" init mimicking torch.rand((K, 1))
    lmbda = jax.random.uniform(k_lmbda, (K, 1), dtype=jnp.float32)

    # (a) module-faithful tiny shape: value is (K, 1) -> fused plain-JAX path
    value_small = jax.random.normal(k_v_small, (K, 1), dtype=jnp.float32)
    loss_s, lm_s = constraint_forward(lmbda, value_small)

    # (b) larger M exercises the tiled Pallas path (grid over M, incl. padding)
    M_big = 1000
    value_big = jax.random.normal(k_v_big, (K, M_big), dtype=jnp.float32)
    loss_b, lm_b = constraint_forward(lmbda, value_big)

    jax.block_until_ready((loss_s, lm_s, loss_b, lm_b))

    ref_loss_s, ref_lm = _reference(lmbda, value_small)
    ref_loss_b, _ = _reference(lmbda, value_big)

    assert loss_s.shape == (1, 1)
    assert loss_b.shape == (1, M_big)
    assert lm_s.shape == (K, 1) and lm_b.shape == (K, 1)
    assert jnp.allclose(lm_s, ref_lm, atol=1e-6)
    assert jnp.allclose(lm_b, ref_lm, atol=1e-6)
    assert jnp.allclose(loss_s, ref_loss_s, atol=1e-5)
    assert jnp.allclose(loss_b, ref_loss_b, atol=1e-4, rtol=1e-5)

    print("KERNEL_OK")
</pallas_src>

<mosaic_0001>
module attributes {stable_mosaic.version = 11 : i64} {
  func.func @_constraint_loss_kernel(%arg0: i32, %arg1: memref<4xf32, #tpu.memory_space<smem>>, %arg2: memref<4x512xf32, #tpu.memory_space<vmem>>, %arg3: memref<1x512xf32, #tpu.memory_space<vmem>>) attributes {dimension_semantics = [#tpu.dimension_semantics<parallel>], iteration_bounds = array<i64: 2>, scalar_prefetch = 1 : i64, scratch_operands = 0 : i64, tpu.core_type = #tpu.core_type<tc>, window_params = [{transform_indices = @transform_0, window_bounds = array<i64: 4, 512>}, {transform_indices = @transform_1, window_bounds = array<i64: 1, 512>}]} {
    %c0 = arith.constant 0 : index
    %0 = memref.load %arg1[%c0] : memref<4xf32, #tpu.memory_space<smem>>
    %c0_0 = arith.constant 0 : index
    %c0_1 = arith.constant 0 : index
    %1 = vector.load %arg2[%c0_0, %c0_1] : memref<4x512xf32, #tpu.memory_space<vmem>>, vector<1x512xf32>
    %2 = vector.broadcast %0 : f32 to vector<1x512xf32>
    %3 = arith.mulf %2, %1 : vector<1x512xf32>
    %c1 = arith.constant 1 : index
    %4 = memref.load %arg1[%c1] : memref<4xf32, #tpu.memory_space<smem>>
    %c1_2 = arith.constant 1 : index
    %c0_3 = arith.constant 0 : index
    %5 = vector.load %arg2[%c1_2, %c0_3] : memref<4x512xf32, #tpu.memory_space<vmem>>, vector<1x512xf32>
    %6 = vector.broadcast %4 : f32 to vector<1x512xf32>
    %7 = arith.mulf %6, %5 : vector<1x512xf32>
    %8 = arith.addf %3, %7 : vector<1x512xf32>
    %c2 = arith.constant 2 : index
    %9 = memref.load %arg1[%c2] : memref<4xf32, #tpu.memory_space<smem>>
    %c2_4 = arith.constant 2 : index
    %c0_5 = arith.constant 0 : index
    %10 = vector.load %arg2[%c2_4, %c0_5] : memref<4x512xf32, #tpu.memory_space<vmem>>, vector<1x512xf32>
    %11 = vector.broadcast %9 : f32 to vector<1x512xf32>
    %12 = arith.mulf %11, %10 : vector<1x512xf32>
    %13 = arith.addf %8, %12 : vector<1x512xf32>
    %c3 = arith.constant 3 : index
    %14 = memref.load %arg1[%c3] : memref<4xf32, #tpu.memory_space<smem>>
    %c3_6 = arith.constant 3 : index
    %c0_7 = arith.constant 0 : index
    %15 = vector.load %arg2[%c3_6, %c0_7] : memref<4x512xf32, #tpu.memory_space<vmem>>, vector<1x512xf32>
    %16 = vector.broadcast %14 : f32 to vector<1x512xf32>
    %17 = arith.mulf %16, %15 : vector<1x512xf32>
    %18 = arith.addf %13, %17 : vector<1x512xf32>
    %c0_8 = arith.constant 0 : index
    %c0_9 = arith.constant 0 : index
    %19 = vector.load %arg3[%c0_8, %c0_9] : memref<1x512xf32, #tpu.memory_space<vmem>>, vector<1x512xf32>
    tpu.vector_store %arg3[%c0_8, %c0_9], %18 {strides = array<i32>} : memref<1x512xf32, #tpu.memory_space<vmem>>, vector<1x512xf32>,
    return
  }
  func.func @transform_0(%arg0: i32, %arg1: memref<4xf32, #tpu.memory_space<smem>>) -> (i32, i32) {
    %c0_i32 = arith.constant 0 : i32
    %c0_i32_0 = arith.constant 0 : i32
    return %c0_i32, %arg0 : i32, i32
  }
  func.func @transform_1(%arg0: i32, %arg1: memref<4xf32, #tpu.memory_space<smem>>) -> (i32, i32) {
    %c0_i32 = arith.constant 0 : i32
    %c0_i32_0 = arith.constant 0 : i32
    return %c0_i32, %arg0 : i32, i32
  }
}

</mosaic_0001>

<bundles_post_ra>
// kernel: tpu_custom_call.1
= control target key start
LH: loop header
LB: loop body
LE: loop exit
PB: predicated region body
PF: predicated region fallthrough
CT: control target
= control target key end

     0   :  { %s623_s0 = inlined_call_operand.hbm [shape: f32[4], index: 0, kind: input, shape index: {}]   ;;  %s624_s1 = inlined_call_operand.hbm [shape: f32[4,1024], index: 1, kind: input, shape index: {}]   ;;  %s625_s2 = inlined_call_operand.hbm [shape: f32[1,1024], index: 2, kind: output, shape index: {}]  }
   0x1   :  { %s321_s11 = scalar_lea.hbm %s623_s0, 16 }
   0x2   :  { %p322_p0 = scmp.ne.s32.totalorder %s623_s0, %s321_s11  ;;  %p325_p1 = scmp.lt.u32.totalorder %s321_s11, %s623_s0 }
   0x4   :  { %p327_p2 = pnand %p325_p1, %p322_p0 }
   0x6   :  { %330 = shalt.err (!%p327_p2)  }
   0x7   :  { %s431_s16 = smov [#allocation3]  }
   0x8   :  { %8 = dma.hbm_to_smem %s623_s0, 16, %s431_s16, [#allocation2] }
   0x9   :  { %405 = dma.done.wait [#allocation2], 16 }
   0xa   :  { %406 = vsyncadd [#allocation2], 4294967280 }
   0xb   :  { %10 = sfence }
   0xc   :  { %11 = vsyncpa [#allocation5], 0 }
   0xd   :  { %13 = vsyncpa [#allocation5 + $0x1], 0 }
   0xe   :  { %14 = vsyncpa [#allocation6], 0 }
   0xf   :  { %16 = vsyncpa [#allocation6 + $0x1], 0  ;;  %s461_s19 = smov 0   ;;  %s463_s20 = smov 0  }
  0x10   :  { %s465_s21 = smov 0   ;;  %s467_s22 = smov 0  }
  0x11 LB: > { %s482_s0 = sadd.s32 4294967295, %s429_s22   ;;  %s252_s23 = sadd.s32 4294967294, %s429_s22   ;;  %s429_s22 = sphi %s467_s22, %s640_s22   ;;  %s425_s21 = sphi %s465_s21, %s639_s21   ;;  %s421_s20 = sphi %s463_s20, %s638_s20   ;;  %s417_s19 = sphi %s461_s19, %s637_s19  }
  0x12   : > { %s486_s24 = sadd.s32 1, %s429_s22   ;;  %s29_s25 = sadd.s32 1, %s425_s21 }
  0x13   : > { %s26_s26 = ssub.s32 %s429_s22, %s486_s24  ;;  %p36_p3 = scmp.ne.s32.totalorder %s425_s21, %s421_s20 }
  0x14   : > { %p27_p4 = scmp.eq.s32.totalorder %s26_s26, 0  ;;  %p37_p5 = scmp.eq.s32.totalorder %s429_s22, 0 }
  0x15   : > { %p42_p6 = scmp.ne.s32.totalorder %s421_s20, %s417_s19  ;;  %p43_p7 = scmp.eq.s32.totalorder %s482_s0, 0 }
  0x16   : > { %s498_s27 = scalar_select %p27_p4, %s425_s21, %s29_s25  }
  0x17   : > { %p500_p8 = por %p37_p5, %p36_p3  ;;  %p504_p9 = por %p43_p7, %p42_p6 }
  0x18   : > { %p66_p10 = scmp.eq.s32.totalorder %s482_s0, 1  ;;  %p72_p11 = scmp.eq.s32.totalorder %s252_s23, 1 }
  0x19   : > { %p286_p13 = scmp.lt.s32.totalorder %s429_s22, 2  ;;  %s92_s4 = sand.u32 1, %s425_s21  }
  0x1a   : > { %p511_p0 = por %p66_p10, %p36_p3  ;;  %p515_p1 = por %p72_p11, %p42_p6 }
  0x1b   : > { %s272_s5 = sshll.u32 %s429_s22, 8  ;;  %s255_s6 = sshll.u32 %s92_s4, 4 }
  0x1c   : > { %s629_s30 = scalar_select %p511_p0, 1, 0 }
  0x1d   : > { %s630_s3 = scalar_select %p515_p1, 1, 0 }
  0x1e   : > { %s524_s9 = scalar_lea.hbm %s624_s1, %s272_s5  ;;  %s96_s10 = scalar_lea.vmem [#allocation4], %s255_s6 }
  0x1f   : > { %s104_s11 = sshll.u32 %s96_s10, 4  ;;  %p528_p2 = pnand %p286_p13, %p500_p8  ;;  %s532_s11 = int_to_ptr.vmem [resolvable:$true] %s104_s11 }
  0x20   : > { %s93_s13 = scalar_lea.sflag [#allocation5], %s92_s4  ;;  %s331_s14 = scalar_lea.hbm %s524_s9, 256 }
  0x21   : > { %p332_p5 = scmp.ne.s32.totalorder %s524_s9, %s331_s14  ;;  %p333_p6 = pneg %p528_p2 }
  0x22   : > { %s336_s17 = scalar_lea.hbm %s624_s1, 512  ;;  %p337_p8 = scmp.lt.u32.totalorder %s524_s9, %s624_s1 }
  0x23   : > { %p334_p7 = pnand %p333_p6, %p332_p5  ;;  %p338_p11 = scmp.lt.u32.totalorder %s336_s17, %s331_s14 }
  0x24   : > { %p340_p12 = scmp.lt.u32.totalorder %s331_s14, %s524_s9 }
  0x25   : > { %p335_p10 = pneg %p334_p7  ;;  %p339_p13 = por %p338_p11, %p337_p8 }
  0x27   : > { %p341_p3 = por %p340_p12, %p339_p13 }
  0x29   : > { %p342_p4 = pnand %p341_p3, %p335_p10 }
  0x2b   : > { %345 = shalt.err (!%p342_p4)
}
  0x2c   : > { %s346_s25 = scalar_lea.vmem %s532_s11, 256  ;;  %s432_s26 = smov [#allocation4]  }
  0x2d   : > { %p347_p5 = scmp.ne.s32.totalorder %s532_s11, %s346_s25  ;;  %s351_s28 = sshll.u32 %s432_s26, 4  ;;  %s352_s28 = int_to_ptr.vmem [resolvable:$false] %s351_s28 }
  0x2e   : > { %s353_s4 = scalar_lea.vmem %s352_s28, 512  ;;  %p354_p0 = scmp.lt.s32.totalorder %s532_s11, %s352_s28 }
  0x2f   : > { %p349_p7 = pnand %p347_p5, %p333_p6  ;;  %p355_p8 = scmp.lt.s32.totalorder %s353_s4, %s346_s25 }
  0x31   : > { %p350_p1 = pneg %p349_p7  ;;  %p356_p11 = por %p355_p8, %p354_p0 }
  0x33   : > { %p357_p12 = pnand %p356_p11, %p350_p1 }
  0x35   : > { %360 = shalt.err (!%p357_p12)
}
  0x36   : > { %281 = dma.hbm_to_vmem [thread:$0]  (!%p528_p2), %s524_s9, 256, %s532_s11, %s93_s13  }
  0x37   : > { %p632_p3 = scmp.lt.s32.totalorder %s429_s22, 3  ;;  %p633_p4 = scmp.ge.s32.totalorder %s429_s22, 1 }
  0x39   : > { %p110_p6 = pnand %p633_p4, %p632_p3 }
  0x3a   : > { %s566_s5 = sand.u32 (!%p110_p6), 1, %s421_s20  }
  0x3b   : > { %113 = sbr.rel (%p110_p6) target bundleno = 96 (0x60), region = 24  ;;  %s259_s6 = sshll.u32 (!%p110_p6), %s566_s5, 4 }
  0x3c   : > { %s116_s7 = scalar_lea.sflag (!%p110_p6), [#allocation5], %s566_s5  ;;  %s119_s8 = scalar_lea.vmem (!%p110_p6), [#allocation4], %s259_s6 }
  0x42   : > { %408 = dma.done.wait (%p504_p9), %s116_s7, 256  }
  0x43   : > { %410 = vsyncadd (%p504_p9), %s116_s7, 4294967040  ;;  %s140_s9 = sld [smem:[#allocation3]]  ;;  %s261_s10 = sld [smem:[#allocation3 + $0x1]]  ;;  %v141_v0 = vld [vmem:[%s119_s8] ss:$4 sm:$0xf]  ;;  %v162_v11 = vlaneseq }
  0x44   : > { %s263_s11 = sld [smem:[#allocation3 + $0x2]]  ;;  %s265_s12 = sld [smem:[#allocation3 + $0x3]]  ;;  %v262_v2 = vld [vmem:[%s119_s8 + $0x1] ss:$4 sm:$0xf] }
  0x45   : > { %s260_s13 = sshll.u32 %s566_s5, 2  ;;  %v264_v5 = vld [vmem:[%s119_s8 + $0x2] ss:$4 sm:$0xf]  ;;  %s273_s15 = sshll.u32 %s482_s0, 6  ;;  %vm164_vm0 = vcmp.lt.s32.totalorder %v162_v11, 512 }
  0x46   : > { %v266_v7 = vld [vmem:[%s119_s8 + $0x3] ss:$4 sm:$0xf]  ;;  %s137_s29 = scalar_lea.vmem [#allocation7], %s260_s13  ;;  %s581_s18 = scalar_lea.hbm %s625_s2, %s273_s15 }
  0x47   : > { %s182_s14 = sshll.u32 %s137_s29, 4  ;;  %s168_s23 = scalar_lea.sflag [#allocation6], %s566_s5  ;;  %s576_s14 = int_to_ptr.vmem [resolvable:$true] %s182_s14 }
  0x48   : > { %s361_s25 = scalar_lea.vmem %s576_s14, 64  ;;  %p634_p0 = scmp.ne.s32.totalorder %s629_s30, 0 }
  0x49   : > { %v142_v1 = vstv %s140_s9  ;;  %v147_v4 = vstv %s261_s10  ;;  %p362_p9 = scmp.ne.s32.totalorder %s576_s14, %s361_s25  ;;  %s433_s0 = smov [#allocation7]  }
  0x4a   : > { %v143_v3 = vmul.f32 %v142_v1, %v141_v0  ;;  %v153_v6 = vstv %s263_s11  ;;  %v148_v8 = vmul.f32 %v262_v2, %v147_v4  ;;  %v159_v10 = vstv %s265_s12  ;;  %s365_s26 = sshll.u32 %s433_s0, 4  ;;  %s366_s26 = int_to_ptr.vmem [resolvable:$false] %s365_s26 }
  0x4b   : > { %v154_v9 = vmul.f32 %v264_v5, %v153_v6  ;;  %v160_v13 = vmul.f32 %v266_v7, %v159_v10  ;;  %p363_p1 = pnand %p362_p9, %p634_p0  ;;  %s367_s28 = scalar_lea.vmem %s366_s26, 128 }
  0x4c   : > { %v149_v12 = vadd.f32 %v148_v8, %v143_v3  ;;  %p368_p10 = scmp.lt.s32.totalorder %s576_s14, %s366_s26  ;;  %p369_p13 = scmp.lt.s32.totalorder %s367_s28, %s361_s25 }
  0x4d   : > { %p364_p2 = pneg %p363_p1 }
  0x4e   : > { %v155_v14 = vadd.f32 %v154_v9, %v149_v12  ;;  %p370_p5 = por %p369_p13, %p368_p10 }
  0x50   : > { %v161_v15 = vadd.f32 %v160_v13, %v155_v14  ;;  %p371_p7 = pnand %p370_p5, %p364_p2 }
  0x52   : > { %166 = vst.msk [vmem:[%s137_s29] sm:$0xf] %vm164_vm0, %v161_v15 }
  0x53   : > { %374 = shalt.err (!%p371_p7)
}
  0x54   : > { %s375_s4 = scalar_lea.hbm %s581_s18, 64  ;;  %s379_s7 = scalar_lea.hbm %s625_s2, 128 }
  0x55   : > { %p376_p8 = scmp.ne.s32.totalorder %s581_s18, %s375_s4  ;;  %p380_p3 = scmp.lt.u32.totalorder %s581_s18, %s625_s2 }
  0x56   : > { %p381_p4 = scmp.lt.u32.totalorder %s379_s7, %s375_s4  ;;  %p383_p9 = scmp.lt.u32.totalorder %s375_s4, %s581_s18 }
  0x57   : > { %p377_p11 = pnand %p376_p8, %p634_p0 }
  0x58   : > { %p382_p6 = por %p381_p4, %p380_p3 }
  0x59   : > { %p378_p12 = pneg %p377_p11 }
  0x5a   : > { %p384_p1 = por %p383_p9, %p382_p6 }
  0x5c   : > { %p385_p2 = pnand %p384_p1, %p378_p12 }
  0x5e   : > { %388 = shalt.err (!%p385_p2)
}
  0x5f   : > { %276 = dma.vmem_to_hbm [thread:$0]  (%p634_p0), %s576_s14, 64, %s581_s18, %s168_s23  }
  0x60 PF: > { %s194_s10 = sand.u32 1, %s417_s19   ;;  %p635_p10 = scmp.ne.s32.totalorder %s630_s3, 0 }
  0x61   : > { %p636_p13 = scmp.ge.s32.totalorder %s429_s22, 2  ;;  %s195_s11 = scalar_lea.sflag [#allocation6], %s194_s10 }
  0x63   : > { %p283_p5 = pnand %p636_p13, %p635_p10 }
  0x65   : > { %412 = dma.done.wait (!%p283_p5), %s195_s11, 64  }
  0x66   : > { %414 = vsyncadd (!%p283_p5), %s195_s11, 4294967232  ;;  %p19_p7 = scmp.ge.s32.totalorder %s486_s24, 4   ;;  %s637_s19 = smov %s421_s20 }
  0x67   : > { %s638_s20 = smov %s425_s21  ;;  %s639_s21 = smov %s498_s27 }
  0x68   : > { %s640_s22 = smov %s486_s24  ;;  %21 = sbr.rel (!%p19_p7) target bundleno = 17 (0x11), region = 72 }
  0x6f   :  { %200 = vsyncpa [#allocation5], 1 }
  0x70   :  { %202 = vsyncpa [#allocation5 + $0x1], 1 }
  0x71   :  { %203 = vsyncpa [#allocation6], 1 }
  0x72   :  { %205 = vsyncpa [#allocation6 + $0x1], 1 }

</bundles_post_ra>
